<compile_context>
chip_gen: v5e
topology: v5e:2x2
jax: 0.10.0
libtpu: 0.0.40
codegen_flags: <defaults>
</compile_context>

<pallas_src>
import functools

import jax
import jax.numpy as jnp
from jax.experimental import pallas as pl
from jax.experimental.pallas import tpu as pltpu


def _pad_channels_kernel(x_ref, o_ref, *, c_in, pad_c):
    """x_ref: (BN, C_in, L) -> o_ref: (BN, C_out, L) with zero pad bands."""
    bn, c_out, l = o_ref.shape

    # Zero only the two pad bands (static Python branches on static shapes).
    if pad_c > 0:
        o_ref[:, :pad_c, :] = jnp.zeros((bn, pad_c, l), o_ref.dtype)
    tail = c_out - (pad_c + c_in)
    if tail > 0:
        o_ref[:, pad_c + c_in:, :] = jnp.zeros((bn, tail, l), o_ref.dtype)

    # Copy the data band once (contiguous, lane-dense along L).
    o_ref[:, pad_c:pad_c + c_in, :] = x_ref[...]


def _choose_block_n(n, per_n_bytes, budget_bytes=4 * 1024 * 1024):
    """Pick how many batch elements to process per grid step.

    Budget keeps (input + output) block <= ~4 MiB, so double-buffered blocks
    stay well under v5e's 16 MiB scoped-VMEM default and v7x's smaller VMEM.
    """
    bn = max(1, min(n, budget_bytes // max(per_n_bytes, 1)))
    if n > 1:
        # Keep at least 2 grid steps so both v7x TensorCores get work.
        bn = min(bn, (n + 1) // 2)
    # Prefer a divisor of n (avoids partial blocks; always terminates at 1).
    while n % bn:
        bn -= 1
    return bn


def lambda_shortcut_a(x, planes):
    """Pallas implementation of the ResNet option-A shortcut lambda."""
    n, c, h, w = x.shape
    pad_c = planes // 4
    h_out = (h + 1) // 2   # ::2 slicing => ceil(h/2)
    w_out = (w + 1) // 2
    c_out = c + 2 * pad_c
    l = h_out * w_out

    # Stride-2 selection + spatial flatten outside the kernel: 4x less HBM
    # traffic into the kernel, and a lane-dense (multiple-of-64/256) last dim.
    x_ds = x[:, :, ::2, ::2].reshape(n, c, l)

    itemsize = jnp.dtype(x.dtype).itemsize
    per_n_bytes = (c + c_out) * l * itemsize
    bn = _choose_block_n(n, per_n_bytes)

    kernel = functools.partial(_pad_channels_kernel, c_in=c, pad_c=pad_c)

    out_flat = pl.pallas_call(
        kernel,
        out_shape=jax.ShapeDtypeStruct((n, c_out, l), x.dtype),
        grid_spec=pltpu.PrefetchScalarGridSpec(
            num_scalar_prefetch=0,
            grid=(n // bn,),
            in_specs=[pl.BlockSpec((bn, c, l), lambda i: (i, 0, 0))],
            out_specs=pl.BlockSpec((bn, c_out, l), lambda i: (i, 0, 0)),
        ),
        compiler_params=pltpu.CompilerParams(
            dimension_semantics=("parallel",)),
    )(x_ds)

    return out_flat.reshape(n, c_out, h_out, w_out)


def _reference(x, planes):
    pad_c = planes // 4
    ds = x[:, :, ::2, ::2]
    return jnp.pad(ds, ((0, 0), (pad_c, pad_c), (0, 0), (0, 0)))


if __name__ == "__main__":
    key = jax.random.PRNGKey(0)
    # Small shapes consistent with the CIFAR ResNet usage.
    N, C, H, W = 2, 4, 16, 16
    planes = 8  # => pad_c = 2, output channels = 8, spatial 8x8
    x = jax.random.normal(key, (N, C, H, W), dtype=jnp.float32)

    out = lambda_shortcut_a(x, planes)
    out = jax.block_until_ready(out)

    ref = _reference(x, planes)
    assert out.shape == ref.shape, (out.shape, ref.shape)
    assert jnp.allclose(out, ref), "Pallas output mismatch vs reference"

    print("KERNEL_OK")
</pallas_src>

<mosaic_0001>
module attributes {stable_mosaic.version = 11 : i64} {
  func.func @_pad_channels_kernel(%arg0: i32, %arg1: memref<1x4x64xf32, #tpu.memory_space<vmem>>, %arg2: memref<1x8x64xf32, #tpu.memory_space<vmem>>) attributes {dimension_semantics = [#tpu.dimension_semantics<parallel>], iteration_bounds = array<i64: 2>, scalar_prefetch = 0 : i64, scratch_operands = 0 : i64, tpu.core_type = #tpu.core_type<tc>, window_params = [{transform_indices = @transform_0, window_bounds = array<i64: 1, 4, 64>}, {transform_indices = @transform_1, window_bounds = array<i64: 1, 8, 64>}]} {
    %cst = arith.constant 0.000000e+00 : f32
    %0 = vector.broadcast %cst : f32 to vector<1x2x64xf32>
    %c0 = arith.constant 0 : index
    %c0_0 = arith.constant 0 : index
    %c0_1 = arith.constant 0 : index
    %1 = vector.load %arg2[%c0, %c0_0, %c0_1] : memref<1x8x64xf32, #tpu.memory_space<vmem>>, vector<1x2x64xf32>
    tpu.vector_store %arg2[%c0, %c0_0, %c0_1], %0 {strides = array<i32>} : memref<1x8x64xf32, #tpu.memory_space<vmem>>, vector<1x2x64xf32>,
    %cst_2 = arith.constant 0.000000e+00 : f32
    %2 = vector.broadcast %cst_2 : f32 to vector<1x2x64xf32>
    %c0_3 = arith.constant 0 : index
    %c6 = arith.constant 6 : index
    %c0_4 = arith.constant 0 : index
    %3 = vector.load %arg2[%c0_3, %c6, %c0_4] : memref<1x8x64xf32, #tpu.memory_space<vmem>>, vector<1x2x64xf32>
    tpu.vector_store %arg2[%c0_3, %c6, %c0_4], %2 {strides = array<i32>} : memref<1x8x64xf32, #tpu.memory_space<vmem>>, vector<1x2x64xf32>,
    %c0_5 = arith.constant 0 : index
    %c0_6 = arith.constant 0 : index
    %c0_7 = arith.constant 0 : index
    %4 = vector.load %arg1[%c0_5, %c0_6, %c0_7] : memref<1x4x64xf32, #tpu.memory_space<vmem>>, vector<1x4x64xf32>
    %c0_8 = arith.constant 0 : index
    %c2 = arith.constant 2 : index
    %c0_9 = arith.constant 0 : index
    %5 = vector.load %arg2[%c0_8, %c2, %c0_9] : memref<1x8x64xf32, #tpu.memory_space<vmem>>, vector<1x4x64xf32>
    tpu.vector_store %arg2[%c0_8, %c2, %c0_9], %4 {strides = array<i32>} : memref<1x8x64xf32, #tpu.memory_space<vmem>>, vector<1x4x64xf32>,
    return
  }
  func.func @transform_0(%arg0: i32) -> (i32, i32, i32) {
    %c0_i32 = arith.constant 0 : i32
    %c0_i32_0 = arith.constant 0 : i32
    %c0_i32_1 = arith.constant 0 : i32
    return %arg0, %c0_i32, %c0_i32_0 : i32, i32, i32
  }
  func.func @transform_1(%arg0: i32) -> (i32, i32, i32) {
    %c0_i32 = arith.constant 0 : i32
    %c0_i32_0 = arith.constant 0 : i32
    %c0_i32_1 = arith.constant 0 : i32
    return %arg0, %c0_i32, %c0_i32_0 : i32, i32, i32
  }
}

</mosaic_0001>

<bundles_post_ra>
// kernel: tpu_custom_call.1
= control target key start
LH: loop header
LB: loop body
LE: loop exit
PB: predicated region body
PF: predicated region fallthrough
CT: control target
= control target key end

     0   :  { %6 = vsyncpa [#allocation3], 0  ;;  %s522_s0 = inlined_call_operand.hbm [shape: f32[2,4,64], index: 0, kind: input, shape index: {}]   ;;  %s523_s1 = inlined_call_operand.hbm [shape: f32[2,8,64], index: 1, kind: output, shape index: {}]  }
   0x1   :  { %8 = vsyncpa [#allocation3 + $0x1], 0 }
   0x2   :  { %9 = vsyncpa [#allocation4], 0 }
   0x3   :  { %11 = vsyncpa [#allocation4 + $0x1], 0  ;;  %s394_s6 = smov 0   ;;  %s396_s7 = smov 0  }
   0x4   :  { %s398_s8 = smov 0   ;;  %s400_s9 = smov 0  }
   0x5 LB: > { %s415_s10 = sadd.s32 4294967295, %s381_s9   ;;  %s226_s11 = sadd.s32 4294967294, %s381_s9   ;;  %s381_s9 = sphi %s400_s9, %s533_s9   ;;  %s377_s8 = sphi %s398_s8, %s532_s8   ;;  %s373_s7 = sphi %s396_s7, %s531_s7   ;;  %s369_s6 = sphi %s394_s6, %s530_s6  }
   0x6   : > { %s419_s12 = sadd.s32 1, %s381_s9   ;;  %s24_s13 = sadd.s32 1, %s377_s8 }
   0x7   : > { %s21_s14 = ssub.s32 %s381_s9, %s419_s12  ;;  %p31_p0 = scmp.ne.s32.totalorder %s377_s8, %s373_s7 }
   0x8   : > { %p22_p1 = scmp.eq.s32.totalorder %s21_s14, 0  ;;  %p32_p2 = scmp.eq.s32.totalorder %s381_s9, 0 }
   0x9   : > { %p37_p3 = scmp.ne.s32.totalorder %s373_s7, %s369_s6  ;;  %p38_p4 = scmp.eq.s32.totalorder %s415_s10, 0 }
   0xa   : > { %s431_s15 = scalar_select %p22_p1, %s377_s8, %s24_s13  }
   0xb   : > { %p433_p5 = por %p32_p2, %p31_p0  ;;  %p437_p6 = por %p38_p4, %p37_p3 }
   0xc   : > { %p61_p7 = scmp.eq.s32.totalorder %s415_s10, 1  ;;  %p67_p8 = scmp.eq.s32.totalorder %s226_s11, 1 }
   0xd   : > { %p250_p10 = scmp.lt.s32.totalorder %s381_s9, 2  ;;  %s87_s20 = sand.u32 1, %s377_s8  }
   0xe   : > { %p444_p11 = por %p61_p7, %p31_p0  ;;  %p448_p12 = por %p67_p8, %p37_p3 }
   0xf   : > { %s230_s21 = sshll.u32 %s381_s9, 2  ;;  %s229_s22 = sshll.u32 %s87_s20, 2 }
  0x10   : > { %s95_s25 = scalar_lea.hbm %s522_s0, %s230_s21  ;;  %s91_s27 = scalar_lea.vmem [#allocation2], %s229_s22 }
  0x11   : > { %s97_s26 = sshll.u32 %s95_s25, 4  ;;  %s99_s28 = sshll.u32 %s91_s27, 4  ;;  %s98_s26 = int_to_ptr.hbm [resolvable:$true] %s97_s26  ;;  %s100_s28 = int_to_ptr.vmem [resolvable:$true] %s99_s28 }
  0x12   : > { %p459_p13 = pnand %p250_p10, %p433_p5  ;;  %p231_p0 = scmp.ge.s32.totalorder %s381_s9, 1 }
  0x13   : > { %p104_p1 = scmp.lt.s32.totalorder %s381_s9, 3  ;;  %s88_s30 = scalar_lea.sflag [#allocation3], %s87_s20 }
  0x14   : > { %s285_s2 = sshra.s32 %s98_s26, 4  ;;  %p289_p3 = pneg %p459_p13  ;;  %s286_s2 = int_to_ptr.hbm [resolvable:$true] %s285_s2 }
  0x15   : > { %s287_s3 = scalar_lea.hbm %s286_s2, 4  ;;  %s292_s11 = scalar_lea.hbm %s522_s0, 8 }
  0x16   : > { %p288_p2 = scmp.ne.s32.totalorder %s286_s2, %s287_s3  ;;  %p293_p5 = scmp.lt.s32.totalorder %s286_s2, %s522_s0 }
  0x17   : > { %p294_p8 = scmp.lt.s32.totalorder %s292_s11, %s287_s3 }
  0x18   : > { %p290_p4 = pnand %p289_p3, %p288_p2 }
  0x19   : > { %p295_p10 = por %p294_p8, %p293_p5 }
  0x1a   : > { %p291_p7 = pneg %p290_p4 }
  0x1c   : > { %p296_p9 = pnand %p295_p10, %p291_p7 }
  0x1e   : > { %299 = shalt.err (!%p296_p9)
}
  0x1f   : > { %245 = dma.hbm_to_vmem [thread:$0]  (!%p459_p13), %s98_s26, 64, %s100_s28, %s88_s30  }
  0x20   : > { %p105_p2 = pnand %p231_p0, %p104_p1 }
  0x21   : > { %s480_s16 = sand.u32 (!%p105_p2), 1, %s373_s7  }
  0x22   : > { %108 = sbr.rel (%p105_p2) target bundleno = 55 (0x37), region = 24  ;;  %s232_s20 = sshll.u32 (!%p105_p2), %s480_s16, 2 }
  0x23   : > { %s111_s21 = scalar_lea.sflag (!%p105_p2), [#allocation3], %s480_s16  ;;  %s114_s22 = scalar_lea.vmem (!%p105_p2), [#allocation2], %s232_s20 }
  0x27   : > { %360 = dma.done.wait (%p437_p6), %s111_s21, 64  }
  0x28   : > { %362 = vsyncadd (%p437_p6), %s111_s21, 4294967232  ;;  %s233_s23 = sshll.u32 %s480_s16, 3  ;;  %vm134_vm0 = vcmask 517120   ;;  %s235_s24 = sshll.u32 %s415_s10, 3  ;;  %v383_v0 = vmov 0.0   ;;  %vm138_vm1 = vcmask 519168  }
  0x29   : > { %s133_s25 = scalar_lea.vmem [#allocation5], %s233_s23  ;;  %s151_s28 = scalar_lea.hbm %s523_s1, %s235_s24  ;;  %v137_v1 = vld [vmem:[%s114_s22] sm:$0xf] }
  0x2a   : > { %135 = vst.msk [vmem:[%s133_s25] sm:$0x3] %vm134_vm0, %v383_v0  ;;  %s153_s29 = sshll.u32 %s133_s25, 4  ;;  %s155_s30 = sshll.u32 %s151_s28, 4  ;;  %s154_s29 = int_to_ptr.vmem [resolvable:$true] %s153_s29  ;;  %s156_s30 = int_to_ptr.hbm [resolvable:$true] %s155_s30 }
  0x2b   : > { %136 = vst.msk [vmem:[%s133_s25 + $0x6] sm:$0x3] %vm134_vm0, %v383_v0  ;;  %s141_s17 = scalar_lea.sflag [#allocation4], %s480_s16  ;;  %s329_s2 = sshra.s32 %s156_s30, 4  ;;  %s330_s2 = int_to_ptr.hbm [resolvable:$true] %s329_s2 }
  0x2c   : > { %139 = vst.msk [vmem:[%s133_s25 + $0x2] sm:$0xf] %vm138_vm1, %v137_v1  ;;  %s331_s10 = scalar_lea.hbm %s330_s2, 8  ;;  %s335_s5 = scalar_lea.hbm %s523_s1, 16 }
  0x2d   : > { %p332_p6 = scmp.ne.s32.totalorder %s330_s2, %s331_s10  ;;  %p336_p0 = scmp.lt.s32.totalorder %s330_s2, %s523_s1 }
  0x2e   : > { %p337_p1 = scmp.lt.s32.totalorder %s335_s5, %s331_s10 }
  0x2f   : > { %p333_p9 = pnand %p332_p6, %p444_p11 }
  0x30   : > { %p338_p3 = por %p337_p1, %p336_p0 }
  0x31   : > { %p334_p13 = pneg %p333_p9 }
  0x33   : > { %p339_p4 = pnand %p338_p3, %p334_p13 }
  0x35   : > { %342 = shalt.err (!%p339_p4)
}
  0x36   : > { %240 = dma.vmem_to_hbm [thread:$0]  (%p444_p11), %s154_s29, 128, %s156_s30, %s141_s17  }
  0x37 PF: > { %s167_s14 = sand.u32 1, %s369_s6   ;;  %p529_p7 = scmp.ge.s32.totalorder %s381_s9, 2 }
  0x38   : > { %s168_s16 = scalar_lea.sflag [#allocation4], %s167_s14 }
  0x39   : > { %p247_p5 = pnand %p529_p7, %p448_p12 }
  0x3b   : > { %p248_p8 = pneg %p247_p5 }
  0x3d   : > { %364 = dma.done.wait (%p248_p8), %s168_s16, 128  }
  0x3e   : > { %366 = vsyncadd (%p248_p8), %s168_s16, 4294967168  ;;  %p14_p10 = scmp.ge.s32.totalorder %s419_s12, 4   ;;  %s530_s6 = smov %s373_s7 }
  0x3f   : > { %s531_s7 = smov %s377_s8  ;;  %s532_s8 = smov %s431_s15 }
  0x40   : > { %s533_s9 = smov %s419_s12  ;;  %16 = sbr.rel (!%p14_p10) target bundleno = 5 (0x5), region = 69 }
  0x45   :  { %174 = vsyncpa [#allocation3], 1 }
  0x46   :  { %176 = vsyncpa [#allocation3 + $0x1], 1 }
  0x47   :  { %177 = vsyncpa [#allocation4], 1 }
  0x48   :  { %179 = vsyncpa [#allocation4 + $0x1], 1 }

</bundles_post_ra>
